<compile_context>
chip_gen: v7x
topology: tpu7x:2x2x1
jax: 0.10.0
libtpu: 0.0.40
codegen_flags: <defaults>
</compile_context>

<pallas_src>
import jax
import jax.numpy as jnp
from jax.experimental import pallas as pl
from jax.experimental.pallas import tpu as pltpu


def _make_focal_kernel(num_classes, n_valid, tile_n, gamma):
    """Build the per-tile kernel; all static parameters are baked in."""

    def kernel(alpha_ref, logits_ref, targets_ref, out_ref):
        # alpha_ref: SMEM (C,) f32 (scalar-prefetched)
        # logits_ref: VMEM (C, TILE_N) f32   (lane-dense over N)
        # targets_ref: VMEM (1, TILE_N) i32
        # out_ref: VMEM (1, 1, 128) f32 partial-sum block for this tile
        pid = pl.program_id(0)

        logits = logits_ref[...]                      # (C, TILE_N)
        tgt = targets_ref[...]                        # (1, TILE_N)

        # ---- running max over the (small) class axis, unrolled: pure VPU ----
        m = logits[0:1, :]
        for c in range(1, num_classes):
            m = jnp.maximum(m, logits[c:c + 1, :])

        # ---- one unrolled pass over classes: softmax denom + target gathers --
        denom = jnp.zeros((1, tile_n), jnp.float32)
        tgt_exp = jnp.zeros((1, tile_n), jnp.float32)
        tgt_shift = jnp.zeros((1, tile_n), jnp.float32)   # logits[target] - m
        alpha_t = jnp.zeros((1, tile_n), jnp.float32)
        for c in range(num_classes):
            row = logits[c:c + 1, :]
            shifted = row - m
            e = jnp.exp(shifted)
            denom = denom + e
            is_c = tgt == c
            tgt_exp = jnp.where(is_c, e, tgt_exp)
            tgt_shift = jnp.where(is_c, shifted, tgt_shift)
            alpha_t = jnp.where(is_c, alpha_ref[c], alpha_t)

        # ce = logsumexp(logits) - logits[target] = log(denom) - (logits[target] - m)
        ce = jnp.log(denom) - tgt_shift
        # pt = softmax(logits)[target]; reuse exp, approx reciprocal -> EUP slot
        pt = tgt_exp * pl.reciprocal(denom, approx=True)

        one_m_pt = 1.0 - pt
        if isinstance(gamma, int) and gamma >= 0:
            mod = jnp.ones((1, tile_n), jnp.float32)
            for _ in range(gamma):                    # gamma=2 -> two VPU muls
                mod = mod * one_m_pt
        else:
            mod = one_m_pt ** gamma
        focal = alpha_t * mod * ce                    # (1, TILE_N)

        # ---- mask out padded columns (beyond the true batch size N) ---------
        col = pid * tile_n + jax.lax.broadcasted_iota(jnp.int32, (1, tile_n), 1)
        focal = jnp.where(col < n_valid, focal, 0.0)

        # ---- lane-aligned fold of TILE_N lanes down to a (1, 128) partial ----
        partial = focal[:, 0:128]
        for k in range(1, tile_n // 128):
            partial = partial + focal[:, k * 128:(k + 1) * 128]
        out_ref[...] = partial.reshape(1, 1, 128)

    return kernel


def _pick_tile_n(n, c):
    # Keep double-buffered (C+1)-row f32 tiles well inside the scoped-VMEM
    # default on every generation (v7x: 64 MiB physical / 32 MiB scoped).
    budget_bytes = 4 * 1024 * 1024
    max_tile = max(128, (budget_bytes // (4 * (c + 1)) // 128) * 128)
    tile = min(4096, max_tile)
    n_rounded = ((n + 127) // 128) * 128          # don't pad a tiny batch to a huge tile
    return max(128, min(tile, n_rounded))


def focal_loss(logits, targets, alpha=None, gamma=2, reduction="mean", tile_n=None):
    """Pallas TPU focal loss (matches the PyTorch module forward).

    logits:  (N, C) float   -- class axis last (PyTorch layout)
    targets: (N,)   int     -- class indices
    alpha:   (C,) float or None
    """
    n, c = logits.shape
    if alpha is None:
        alpha = jnp.ones((c,), jnp.float32)
    if tile_n is None:
        tile_n = _pick_tile_n(n, c)
    num_tiles = pl.cdiv(n, tile_n)
    n_pad = num_tiles * tile_n

    # Lane-dense layout: N on the 128-lane axis, tiny C on sublanes.
    logits_t = jnp.transpose(logits.astype(jnp.float32))              # (C, N)
    logits_t = jnp.pad(logits_t, ((0, 0), (0, n_pad - n)))
    targets_p = jnp.pad(targets.astype(jnp.int32), (0, n_pad - n)).reshape(1, n_pad)
    alpha_f = alpha.astype(jnp.float32).reshape(c)

    kernel = _make_focal_kernel(c, n, tile_n, gamma)

    grid_spec = pltpu.PrefetchScalarGridSpec(
        num_scalar_prefetch=1,                                        # alpha -> SMEM
        grid=(num_tiles,),
        in_specs=[
            pl.BlockSpec((c, tile_n), lambda i, alpha_sref: (0, i)),  # logits tile
            pl.BlockSpec((1, tile_n), lambda i, alpha_sref: (0, i)),  # targets tile
        ],
        out_specs=pl.BlockSpec((1, 1, 128), lambda i, alpha_sref: (i, 0, 0)),
    )

    partials = pl.pallas_call(
        kernel,
        out_shape=jax.ShapeDtypeStruct((num_tiles, 1, 128), jnp.float32),
        grid_spec=grid_spec,
        compiler_params=pltpu.CompilerParams(
            dimension_semantics=("parallel",),    # independent tiles (uses both v7x TCs)
        ),
    )(alpha_f, logits_t, targets_p)

    total = jnp.sum(partials)
    if reduction == "mean":
        return total / jnp.float32(n)
    elif reduction == "sum":
        return total
    else:
        # TODO(synk): reduction='none' (per-element output) is not implemented
        # in this fused-reduction kernel.
        raise NotImplementedError("reduction='none' not supported by this kernel")


def _reference(logits, targets, alpha, gamma=2):
    # pure-JAX reference of the PyTorch forward, for sanity checking
    lse = jax.nn.logsumexp(logits, axis=-1)
    tl = jnp.take_along_axis(logits, targets[:, None], axis=-1)[:, 0]
    ce = lse - tl
    pt = jnp.exp(-ce)
    alpha_t = alpha[targets]
    return jnp.mean(alpha_t * (1.0 - pt) ** gamma * ce)


if __name__ == "__main__":
    key = jax.random.PRNGKey(0)
    k1, k2, k3, k4 = jax.random.split(key, 4)

    # Case 1: small shapes matching the module's typical usage (batch=16, classes=4)
    N, C = 16, 4
    logits = jax.random.normal(k1, (N, C), dtype=jnp.float32)
    targets = jax.random.randint(k2, (N,), 0, C, dtype=jnp.int32)
    alpha = jnp.array([0.25, 0.5, 0.75, 1.0], dtype=jnp.float32)

    loss = focal_loss(logits, targets, alpha)
    jax.block_until_ready(loss)
    ref = _reference(logits, targets, alpha)
    # slightly relaxed tolerance: pt uses the hardware approximate reciprocal
    assert jnp.allclose(loss, ref, rtol=5e-3, atol=1e-5), (loss, ref)

    # Case 2: ragged batch spanning multiple grid tiles (exercises pad masking)
    N2 = 300
    logits2 = jax.random.normal(k3, (N2, C), dtype=jnp.float32)
    targets2 = jax.random.randint(k4, (N2,), 0, C, dtype=jnp.int32)
    loss2 = focal_loss(logits2, targets2, alpha, tile_n=128)
    jax.block_until_ready(loss2)
    ref2 = _reference(logits2, targets2, alpha)
    assert jnp.allclose(loss2, ref2, rtol=5e-3, atol=1e-5), (loss2, ref2)

    print("KERNEL_OK")
</pallas_src>

<mosaic_0001>
module attributes {stable_mosaic.version = 11 : i64} {
  func.func @kernel(%arg0: i32, %arg1: memref<4xf32, #tpu.memory_space<smem>>, %arg2: memref<4x128xf32, #tpu.memory_space<vmem>>, %arg3: memref<1x128xi32, #tpu.memory_space<vmem>>, %arg4: memref<1x1x128xf32, #tpu.memory_space<vmem>>) attributes {dimension_semantics = [#tpu.dimension_semantics<parallel>], iteration_bounds = array<i64: 1>, scalar_prefetch = 1 : i64, scratch_operands = 0 : i64, tpu.core_type = #tpu.core_type<tc>, window_params = [{transform_indices = @transform_0, window_bounds = array<i64: 4, 128>}, {transform_indices = @transform_1, window_bounds = array<i64: 1, 128>}, {transform_indices = @transform_2, window_bounds = array<i64: 1, 1, 128>}]} {
    %c0 = arith.constant 0 : index
    %c0_0 = arith.constant 0 : index
    %0 = vector.load %arg2[%c0, %c0_0] : memref<4x128xf32, #tpu.memory_space<vmem>>, vector<4x128xf32>
    %c0_1 = arith.constant 0 : index
    %c0_2 = arith.constant 0 : index
    %1 = vector.load %arg3[%c0_1, %c0_2] : memref<1x128xi32, #tpu.memory_space<vmem>>, vector<1x128xi32>
    %2 = vector.extract_strided_slice %0 {offsets = [0, 0], sizes = [1, 128], strides = [1, 1]} : vector<4x128xf32> to vector<1x128xf32>
    %3 = vector.extract_strided_slice %0 {offsets = [1, 0], sizes = [1, 128], strides = [1, 1]} : vector<4x128xf32> to vector<1x128xf32>
    %4 = arith.maximumf %2, %3 : vector<1x128xf32>
    %5 = vector.extract_strided_slice %0 {offsets = [2, 0], sizes = [1, 128], strides = [1, 1]} : vector<4x128xf32> to vector<1x128xf32>
    %6 = arith.maximumf %4, %5 : vector<1x128xf32>
    %7 = vector.extract_strided_slice %0 {offsets = [3, 0], sizes = [1, 128], strides = [1, 1]} : vector<4x128xf32> to vector<1x128xf32>
    %8 = arith.maximumf %6, %7 : vector<1x128xf32>
    %cst = arith.constant 0.000000e+00 : f32
    %9 = vector.broadcast %cst : f32 to vector<1x128xf32>
    %cst_3 = arith.constant 0.000000e+00 : f32
    %10 = vector.broadcast %cst_3 : f32 to vector<1x128xf32>
    %cst_4 = arith.constant 0.000000e+00 : f32
    %11 = vector.broadcast %cst_4 : f32 to vector<1x128xf32>
    %cst_5 = arith.constant 0.000000e+00 : f32
    %12 = vector.broadcast %cst_5 : f32 to vector<1x128xf32>
    %13 = vector.extract_strided_slice %0 {offsets = [0, 0], sizes = [1, 128], strides = [1, 1]} : vector<4x128xf32> to vector<1x128xf32>
    %14 = arith.subf %13, %8 : vector<1x128xf32>
    %15 = math.exp %14 : vector<1x128xf32>
    %16 = arith.addf %9, %15 : vector<1x128xf32>
    %c0_i32 = arith.constant 0 : i32
    %17 = vector.broadcast %c0_i32 : i32 to vector<1x128xi32>
    %18 = arith.cmpi eq, %1, %17 : vector<1x128xi32>
    %19 = arith.select %18, %15, %10 : vector<1x128xi1>, vector<1x128xf32>
    %20 = arith.select %18, %14, %11 : vector<1x128xi1>, vector<1x128xf32>
    %c0_6 = arith.constant 0 : index
    %21 = memref.load %arg1[%c0_6] : memref<4xf32, #tpu.memory_space<smem>>
    %22 = vector.broadcast %21 : f32 to vector<1x128xf32>
    %23 = arith.select %18, %22, %12 : vector<1x128xi1>, vector<1x128xf32>
    %24 = vector.extract_strided_slice %0 {offsets = [1, 0], sizes = [1, 128], strides = [1, 1]} : vector<4x128xf32> to vector<1x128xf32>
    %25 = arith.subf %24, %8 : vector<1x128xf32>
    %26 = math.exp %25 : vector<1x128xf32>
    %27 = arith.addf %16, %26 : vector<1x128xf32>
    %c1_i32 = arith.constant 1 : i32
    %28 = vector.broadcast %c1_i32 : i32 to vector<1x128xi32>
    %29 = arith.cmpi eq, %1, %28 : vector<1x128xi32>
    %30 = arith.select %29, %26, %19 : vector<1x128xi1>, vector<1x128xf32>
    %31 = arith.select %29, %25, %20 : vector<1x128xi1>, vector<1x128xf32>
    %c1 = arith.constant 1 : index
    %32 = memref.load %arg1[%c1] : memref<4xf32, #tpu.memory_space<smem>>
    %33 = vector.broadcast %32 : f32 to vector<1x128xf32>
    %34 = arith.select %29, %33, %23 : vector<1x128xi1>, vector<1x128xf32>
    %35 = vector.extract_strided_slice %0 {offsets = [2, 0], sizes = [1, 128], strides = [1, 1]} : vector<4x128xf32> to vector<1x128xf32>
    %36 = arith.subf %35, %8 : vector<1x128xf32>
    %37 = math.exp %36 : vector<1x128xf32>
    %38 = arith.addf %27, %37 : vector<1x128xf32>
    %c2_i32 = arith.constant 2 : i32
    %39 = vector.broadcast %c2_i32 : i32 to vector<1x128xi32>
    %40 = arith.cmpi eq, %1, %39 : vector<1x128xi32>
    %41 = arith.select %40, %37, %30 : vector<1x128xi1>, vector<1x128xf32>
    %42 = arith.select %40, %36, %31 : vector<1x128xi1>, vector<1x128xf32>
    %c2 = arith.constant 2 : index
    %43 = memref.load %arg1[%c2] : memref<4xf32, #tpu.memory_space<smem>>
    %44 = vector.broadcast %43 : f32 to vector<1x128xf32>
    %45 = arith.select %40, %44, %34 : vector<1x128xi1>, vector<1x128xf32>
    %46 = vector.extract_strided_slice %0 {offsets = [3, 0], sizes = [1, 128], strides = [1, 1]} : vector<4x128xf32> to vector<1x128xf32>
    %47 = arith.subf %46, %8 : vector<1x128xf32>
    %48 = math.exp %47 : vector<1x128xf32>
    %49 = arith.addf %38, %48 : vector<1x128xf32>
    %c3_i32 = arith.constant 3 : i32
    %50 = vector.broadcast %c3_i32 : i32 to vector<1x128xi32>
    %51 = arith.cmpi eq, %1, %50 : vector<1x128xi32>
    %52 = arith.select %51, %48, %41 : vector<1x128xi1>, vector<1x128xf32>
    %53 = arith.select %51, %47, %42 : vector<1x128xi1>, vector<1x128xf32>
    %c3 = arith.constant 3 : index
    %54 = memref.load %arg1[%c3] : memref<4xf32, #tpu.memory_space<smem>>
    %55 = vector.broadcast %54 : f32 to vector<1x128xf32>
    %56 = arith.select %51, %55, %45 : vector<1x128xi1>, vector<1x128xf32>
    %57 = math.log %49 : vector<1x128xf32>
    %58 = arith.subf %57, %53 : vector<1x128xf32>
    %59 = tpu.reciprocal %49 {approx = true} : vector<1x128xf32> -> vector<1x128xf32>
    %60 = arith.mulf %52, %59 : vector<1x128xf32>
    %cst_7 = arith.constant 1.000000e+00 : f32
    %61 = vector.broadcast %cst_7 : f32 to vector<1x128xf32>
    %62 = arith.subf %61, %60 : vector<1x128xf32>
    %cst_8 = arith.constant 1.000000e+00 : f32
    %63 = vector.broadcast %cst_8 : f32 to vector<1x128xf32>
    %64 = arith.mulf %63, %62 : vector<1x128xf32>
    %65 = arith.mulf %64, %62 : vector<1x128xf32>
    %66 = arith.mulf %56, %65 : vector<1x128xf32>
    %67 = arith.mulf %66, %58 : vector<1x128xf32>
    %c128_i32 = arith.constant 128 : i32
    %68 = arith.muli %arg0, %c128_i32 : i32
    %69 = tpu.iota {dimensions = array<i32: 1>} : vector<1x128xi32>
    %70 = vector.broadcast %68 : i32 to vector<1x128xi32>
    %71 = arith.addi %70, %69 : vector<1x128xi32>
    %c16_i32 = arith.constant 16 : i32
    %72 = vector.broadcast %c16_i32 : i32 to vector<1x128xi32>
    %73 = arith.cmpi slt, %71, %72 : vector<1x128xi32>
    %cst_9 = arith.constant 0.000000e+00 : f32
    %74 = vector.broadcast %cst_9 : f32 to vector<1x128xf32>
    %75 = arith.select %73, %67, %74 : vector<1x128xi1>, vector<1x128xf32>
    %76 = vector.shape_cast %75 : vector<1x128xf32> to vector<1x1x128xf32>
    %c0_10 = arith.constant 0 : index
    %c0_11 = arith.constant 0 : index
    %c0_12 = arith.constant 0 : index
    %77 = vector.load %arg4[%c0_10, %c0_11, %c0_12] : memref<1x1x128xf32, #tpu.memory_space<vmem>>, vector<1x1x128xf32>
    tpu.vector_store %arg4[%c0_10, %c0_11, %c0_12], %76 {strides = array<i32>} : memref<1x1x128xf32, #tpu.memory_space<vmem>>, vector<1x1x128xf32>,
    return
  }
  func.func @transform_0(%arg0: i32, %arg1: memref<4xf32, #tpu.memory_space<smem>>) -> (i32, i32) {
    %c0_i32 = arith.constant 0 : i32
    %c0_i32_0 = arith.constant 0 : i32
    return %c0_i32, %arg0 : i32, i32
  }
  func.func @transform_1(%arg0: i32, %arg1: memref<4xf32, #tpu.memory_space<smem>>) -> (i32, i32) {
    %c0_i32 = arith.constant 0 : i32
    %c0_i32_0 = arith.constant 0 : i32
    return %c0_i32, %arg0 : i32, i32
  }
  func.func @transform_2(%arg0: i32, %arg1: memref<4xf32, #tpu.memory_space<smem>>) -> (i32, i32, i32) {
    %c0_i32 = arith.constant 0 : i32
    %c0_i32_0 = arith.constant 0 : i32
    %c0_i32_1 = arith.constant 0 : i32
    return %arg0, %c0_i32, %c0_i32_0 : i32, i32, i32
  }
}

</mosaic_0001>

<bundles_post_ra>
// kernel: tpu_custom_call.1
= control target key start
LH: loop header
LB: loop body
LE: loop exit
PB: predicated region body
PF: predicated region fallthrough
CT: control target
= control target key end

     0   :  { %s389_s0 = inlined_call_operand.hbm [shape: f32[4], index: 0, kind: input, shape index: {}]   ;;  %s390_s1 = inlined_call_operand.hbm [shape: f32[4,128], index: 1, kind: input, shape index: {}]   ;;  %s391_s2 = inlined_call_operand.vmem [shape: s32[1,128], index: 2, kind: input, shape index: {}]   ;;  %s392_s3 = inlined_call_operand.hbm [shape: f32[1,1,128], index: 3, kind: output, shape index: {}]  }
   0x1   :  { %s249_s14 = scalar_lea.hbm %s389_s0, 16 }
   0x2   :  { %p250_p0 = scmp.ne.s32.totalorder %s389_s0, %s249_s14  ;;  %p253_p1 = scmp.lt.u32.totalorder %s249_s14, %s389_s0 }
   0x4   :  { %p255_p2 = pnand %p253_p1, %p250_p0 }
   0x6   :  { %258 = shalt.err (!%p255_p2)  }
   0x7   :  { %s309_s19 = smov [#allocation3]  }
   0x8   :  { %9 = dma.hbm_to_smem %s389_s0, 16, %s309_s19, [#allocation2] }
   0x9   :  { %303 = dma.done.wait [#allocation2], 16 }
   0xa   :  { %304 = vsyncadd [#allocation2], 4294967280 }
   0xb   :  { %11 = sfence }
   0xc   :  { %12 = vsyncpa [#allocation5], 0 }
   0xd   :  { %13 = vsyncpa [#allocation6], 0  ;;  %s310_s22 = smov [#allocation4]   ;;  %s259_s26 = scalar_lea.hbm %s390_s1, 64 }
   0xe   :  { %s20_s23 = sshll.u32 %s310_s22, 4  ;;  %p260_p3 = scmp.ne.s32.totalorder %s390_s1, %s259_s26  ;;  %s21_s23 = int_to_ptr.vmem [resolvable:$true] %s20_s23 }
   0xf   :  { %p263_p4 = scmp.lt.u32.totalorder %s259_s26, %s390_s1 }
  0x11   :  { %p265_p5 = pnand %p263_p4, %p260_p3 }
  0x13   :  { %268 = shalt.err (!%p265_p5)
}
  0x14   :  { %s269_s0 = scalar_lea.vmem %s21_s23, 64  ;;  %p274_p7 = scmp.lt.s32.totalorder %s21_s23, %s21_s23 }
  0x15   :  { %p270_p6 = scmp.ne.s32.totalorder %s21_s23, %s269_s0  ;;  %p275_p8 = scmp.lt.s32.totalorder %s269_s0, %s269_s0 }
  0x17   :  { %p276_p9 = por %p275_p8, %p274_p7 }
  0x19   :  { %p277_p10 = pnand %p276_p9, %p270_p6 }
  0x1b   :  { %280 = shalt.err (!%p277_p10)
}
  0x1c   :  { %23 = dma.hbm_to_vmem [thread:$0]  %s390_s1, 64, %s21_s23, [#allocation5]  }
  0x1d   :  { %305 = dma.done.wait [#allocation5], 64  }
  0x1e   :  { %306 = vsyncadd [#allocation5], 4294967232  ;;  %v29_v0 = vld [vmem:[#allocation4] sm:$0xf]  ;;  %v311_v17 = vmov 1966171168   ;;  %v65_v19 = vlaneseq }
  0x1f   :  { %v32_v1 = vrot.slane %v29_v0, 1  ;;  %v35_v2 = vrot.slane %v29_v0, 2  ;;  %v38_v4 = vrot.slane %v29_v0, 3  ;;  %v63_v18 = vunpack.c.l.s4 %v311_v17  ;;  %v30_v31 = vld [vmem:[%s391_s2] sm:$0x1]  ;;  %s361_s7 = sld [smem:[#allocation3]] }
  0x20   :  { %v66_v22 = vshrl.u32 %v65_v19, 7  ;;  %vm45_vm0 = vcmp.eq.s32.totalorder %v30_v31, 0  ;;  %s363_s8 = sld [smem:[#allocation3 + $0x1]]  ;;  %vm61_vm1 = vcmp.eq.s32.totalorder %v30_v31, 1  ;;  %s231_s2 = sld [smem:[#allocation3 + $0x2]]  ;;  %vm109_vm2 = vcmp.eq.s32.totalorder %v30_v31, 2 }
  0x21   :  { %v34_v3 = vmax.f32 %v29_v0, %v32_v1  ;;  %v64_v21 = vunpack.c.0.s8 %v63_v18  ;;  %s232_s9 = sld [smem:[#allocation3 + $0x3]]  ;;  %vm157_vm3 = vcmp.eq.s32.totalorder %v30_v31, 3  ;;  %s312_s10 = smov [#allocation7]  }
  0x22   :  { %s221_s11 = sshll.u32 %s312_s10, 4  ;;  %s222_s11 = int_to_ptr.vmem [resolvable:$true] %s221_s11 }
  0x23   :  { %v37_v5 = vmax.f32 %v34_v3, %v35_v2  ;;  %v67_v23 = vsub.s32 %v64_v21, %v66_v22  ;;  %s281_s12 = scalar_lea.vmem %s222_s11, 16  ;;  %s285_s13 = scalar_lea.vmem %s222_s11, 32 }
  0x24   :  { %p282_p11 = scmp.ne.s32.totalorder %s222_s11, %s281_s12  ;;  %p286_p12 = scmp.lt.s32.totalorder %s222_s11, %s222_s11 }
  0x25   :  { %v40_v6 = vmax.f32 %v37_v5, %v38_v4  ;;  %v49_v51 = vstv %s361_s7  ;;  %p287_p13 = scmp.lt.s32.totalorder %s285_s13, %s281_s12 }
  0x26   :  { %v98_v55 = vstv %s363_s8  ;;  %v50_v58 = vsel %vm45_vm0, %v49_v51, 0.0  ;;  %v146_v63 = vstv %s231_s2 }
  0x27   :  { %v41_v7 = vsub.f32 %v29_v0, %v40_v6  ;;  %v52_v8 = vrot.slane %v40_v6, 7  ;;  %v100_v9 = vrot.slane %v40_v6, 6  ;;  %v148_v10 = vrot.slane %v40_v6, 5  ;;  %p288_p0 = por %p287_p13, %p286_p12 }
  0x28   :  { %v99_v62 = vsel %vm61_vm1, %v98_v55, %v50_v58  ;;  %v196_v6 = vstv %s232_s9 }
  0x29   :  { %v42_v11 = vmul.f32 1.442695, %v41_v7  ;;  %v54_v12 = vsub.f32 %v29_v0, %v52_v8  ;;  %v102_v13 = vsub.f32 %v29_v0, %v100_v9  ;;  %v150_v14 = vsub.f32 %v29_v0, %v148_v10  ;;  %p289_p1 = pnand %p288_p0, %p282_p11 }
  0x2a   :  { %v47_v54 = vsel %vm45_vm0, %v41_v7, 0.0  ;;  %v147_v5 = vsel %vm109_vm2, %v146_v63, %v99_v62 }
  0x2b   :  { %v55_v15 = vmul.f32 1.442695, %v54_v12  ;;  %v103_v16 = vmul.f32 1.442695, %v102_v13  ;;  %237 = vpow2.f32 %v42_v11  ;;  %v151_v20 = vmul.f32 1.442695, %v150_v14 }
  0x2c   :  { %v86_v37 = vrot.slane %v54_v12, %v67_v23  ;;  %v183_v40 = vrot.slane %v150_v14, %v67_v23  ;;  %v134_v42 = vrot.slane %v102_v13, %v67_v23  ;;  %v197_v11 = vsel %vm157_vm3, %v196_v6, %v147_v5 }
  0x2d   :  { %239 = vpow2.f32 %v55_v15  ;;  %v209_v12 = vand.u32 127, %v65_v19 }
  0x2e   :  { %241 = vpow2.f32 %v103_v16  ;;  %v87_v45 = vcombine.high %v86_v37, %v86_v37  ;;  %v184_v48 = vcombine.high %v183_v40, %v183_v40  ;;  %v141_v50 = vrot.slane %v134_v42, %v67_v23 }
  0x2f   :  { %243 = vpow2.f32 %v151_v20  ;;  %vm212_vm4 = vcmp.lt.s32.totalorder %v209_v12, 16 }
  0x30   :  { %v94_v53 = vrot.slane %v87_v45, %v67_v23  ;;  %v191_v57 = vrot.slane %v184_v48, %v67_v23  ;;  %v142_v60 = vcombine.high %v141_v50, %v141_v50 }
  0x32   :  { %v96_v61 = vsel %vm61_vm1, %v94_v53, %v47_v54  ;;  %v192_v1 = vcombine.high %v191_v57, %v191_v57 }
  0x33   :  { %v144_v3 = vsel %vm109_vm2, %v142_v60, %v96_v61 }
  0x34   :  { %v194_v9 = vsel %vm157_vm3, %v192_v1, %v144_v3 }
  0x35   :  { %v238_v24 = vpop.eup %237 }
  0x36   :  { %v46_v46 = vsel %vm45_vm0, %v238_v24, 0.0 }
  0x37   :  { %v240_v25 = vpop.eup %239 }
  0x38   :  { %v242_v26 = vpop.eup %241  ;;  %v58_v27 = vrot.slane %v240_v25, 1  ;;  %v68_v28 = vrot.slane %v240_v25, %v67_v23 }
  0x39   :  { %v244_v29 = vpop.eup %243  ;;  %v106_v30 = vrot.slane %v242_v26, 2  ;;  %v116_v33 = vrot.slane %v242_v26, %v67_v23 }
  0x3a   :  { %v60_v32 = vadd.f32 %v238_v24, %v58_v27  ;;  %v154_v34 = vrot.slane %v244_v29, 3  ;;  %v164_v35 = vrot.slane %v244_v29, %v67_v23  ;;  %v69_v36 = vcombine.high %v68_v28, %v68_v28 }
  0x3b   :  { %v123_v41 = vrot.slane %v116_v33, %v67_v23 }
  0x3c   :  { %v108_v38 = vadd.f32 %v106_v30, %v60_v32  ;;  %v165_v39 = vcombine.high %v164_v35, %v164_v35  ;;  %v76_v44 = vrot.slane %v69_v36, %v67_v23 }
  0x3d   :  { %v124_v49 = vcombine.high %v123_v41, %v123_v41 }
  0x3e   :  { %v156_v43 = vadd.f32 %v154_v34, %v108_v38  ;;  %v172_v47 = vrot.slane %v165_v39, %v67_v23  ;;  %v78_v52 = vsel %vm61_vm1, %v76_v44, %v46_v46 }
  0x3f   :  { %v126_v59 = vsel %vm109_vm2, %v124_v49, %v78_v52 }
  0x40   :  { %245 = vlog2.f32 %v156_v43  ;;  %v173_v56 = vcombine.high %v172_v47, %v172_v47 }
  0x41   :  { %247 = vrcp.f32 %v156_v43 }
  0x42   :  { %v175_v0 = vsel %vm157_vm3, %v173_v56, %v126_v59 }
  0x4a   :  { %v246_v2 = vpop.eup %245 }
  0x4b   :  { %v248_v4 = vpop.eup %247  ;;  %v199_v7 = vmul.f32 0.6931472, %v246_v2 }
  0x4c   :  { %v202_v8 = vmul.f32 %v248_v4, %v175_v0 }
  0x4d   :  { %v200_v13 = vsub.f32 %v199_v7, %v194_v9 }
  0x4e   :  { %v203_v10 = vsub.f32 1.0, %v202_v8 }
  0x50   :  { %v204_v14 = vmul.f32 %v203_v10, %v203_v10 }
  0x52   :  { %v205_v15 = vmul.f32 %v204_v14, %v197_v11 }
  0x54   :  { %v206_v16 = vmul.f32 %v205_v15, %v200_v13 }
  0x56   :  { %v213_v17 = vsel %vm212_vm4, %v206_v16, 0.0 }
  0x57   :  { %214 = vst [vmem:[#allocation7] sm:$0x1] %v213_v17 }
  0x58   :  { %292 = shalt.err (!%p289_p1)
}
  0x59   :  { %s293_s16 = scalar_lea.hbm %s392_s3, 16 }
  0x5a   :  { %p294_p2 = scmp.ne.s32.totalorder %s392_s3, %s293_s16  ;;  %p297_p3 = scmp.lt.u32.totalorder %s293_s16, %s392_s3 }
  0x5c   :  { %p299_p4 = pnand %p297_p3, %p294_p2 }
  0x5e   :  { %302 = shalt.err (!%p299_p4)
}
  0x5f   :  { %224 = dma.vmem_to_hbm [thread:$0]  %s222_s11, 16, %s392_s3, [#allocation6]  }
  0x60   :  { %307 = dma.done.wait [#allocation6], 16  }
  0x61   :  { %308 = vsyncadd [#allocation6], 4294967280 }
  0x62   :  { %228 = vsyncpa [#allocation5], 1 }
  0x63   :  { %229 = vsyncpa [#allocation6], 1 }

</bundles_post_ra>
